<compile_context>
chip_gen: v7x
topology: tpu7x:2x2x1
jax: 0.10.0
libtpu: 0.0.40
codegen_flags: <defaults>
</compile_context>

<pallas_src>
import jax
import jax.numpy as jnp
from jax.experimental import pallas as pl
from jax.experimental.pallas import tpu as pltpu


def _cross_interaction_kernel(x0_ref, h_ref, w_ref, b_ref, o_ref):
    # x0_ref, h_ref, o_ref: (TB, D); w_ref, b_ref: (1, D)
    # score = hidden @ W^T as a lane reduction: multiply in the input dtype,
    # accumulate in f32 (matches MXU-style bf16xbf16->f32 accumulation).
    score = jnp.sum(h_ref[...] * w_ref[...], axis=-1, keepdims=True,
                    dtype=jnp.float32)                          # (TB, 1) f32
    # FMA in f32; cast only at the store.
    out = (score * x0_ref[...].astype(jnp.float32)
           + b_ref[...].astype(jnp.float32))
    o_ref[...] = out.astype(o_ref.dtype)


def _round_up(x, m):
    return ((x + m - 1) // m) * m


def cross_interaction_layer(input_embeddings, hidden_states, weight, bias):
    """DCN cross layer: (hidden_states @ W^T) * input_embeddings + bias.

    input_embeddings, hidden_states: (B, D); weight: (1, D); bias: (D,).
    """
    B, D = input_embeddings.shape
    dtype = input_embeddings.dtype
    itemsize = jnp.dtype(dtype).itemsize
    sublane = 16 if itemsize == 2 else 8
    d_lanes = max(128, _round_up(D, 128))      # lane-padded width inside VMEM

    # ~4 MiB per (tb, D) operand tile: >=1 MiB/operand reaches the ~86%
    # HBM-roofline regime; 2 bufs x 3 operands x 4 MiB = 24 MiB double-buffered
    # footprint fits every generation (v7x: 64 MiB physical VMEM).
    per_operand_bytes = 4 * 1024 * 1024
    tb = per_operand_bytes // (d_lanes * itemsize)
    tb = min(tb, _round_up(B, sublane))
    tb = max(sublane, (tb // sublane) * sublane)

    # Ensure the "parallel" batch axis has >= 2 steps when there is enough
    # work, so v7x's two TensorCores both stream tiles.
    if pl.cdiv(B, tb) < 2 and B > sublane:
        tb = max(sublane, _round_up(pl.cdiv(B, 2), sublane))

    # Ragged last block: OOB reads are padded, OOB writes dropped. No HBM
    # padding / output slicing needed.
    grid = (pl.cdiv(B, tb),)

    w2d = weight.reshape(1, D)
    b2d = bias.reshape(1, D)

    # VMEM budget: 3 double-buffered (tb, d_lanes) tiles + tiny (1, D) params.
    tile_bytes = tb * d_lanes * itemsize
    param_bytes = 2 * 2 * d_lanes * 4
    vmem_need = 2 * 3 * tile_bytes + param_bytes
    vmem_limit = int(min(max(vmem_need + (4 << 20), 16 << 20), 64 << 20))

    return pl.pallas_call(
        _cross_interaction_kernel,
        out_shape=jax.ShapeDtypeStruct((B, D), dtype),
        grid_spec=pl.GridSpec(
            grid=grid,
            in_specs=[
                pl.BlockSpec((tb, D), lambda i: (i, 0)),   # input_embeddings
                pl.BlockSpec((tb, D), lambda i: (i, 0)),   # hidden_states
                pl.BlockSpec((1, D), lambda i: (0, 0)),    # weight (grid-invariant)
                pl.BlockSpec((1, D), lambda i: (0, 0)),    # bias   (grid-invariant)
            ],
            out_specs=pl.BlockSpec((tb, D), lambda i: (i, 0)),
        ),
        compiler_params=pltpu.CompilerParams(
            dimension_semantics=("parallel",),   # independent batch tiles
            vmem_limit_bytes=vmem_limit,
        ),
        cost_estimate=pl.CostEstimate(
            flops=4 * B * D,
            transcendentals=0,
            bytes_accessed=3 * B * D * itemsize + 2 * D * 4,
        ),
    )(input_embeddings, hidden_states, w2d, b2d)


def reference(input_embeddings, hidden_states, weight, bias):
    score = hidden_states @ weight.reshape(-1, 1)  # (B, 1)
    return score * input_embeddings + bias


if __name__ == "__main__":
    # Deliberately non-aligned small shapes: exercises the ragged last batch
    # block (B not a multiple of tb) and the full-D (non-128-multiple) block.
    B, D = 300, 96
    key = jax.random.PRNGKey(0)
    k1, k2, k3, k4 = jax.random.split(key, 4)

    input_embeddings = jax.random.normal(k1, (B, D), dtype=jnp.float32)
    hidden_states = jax.random.normal(k2, (B, D), dtype=jnp.float32)

    # Mimics nn.Linear(D, 1, bias=False) weight; bias Parameter (D,) (random
    # here to exercise the add; module initializes it to zeros).
    bound = 1.0 / (D ** 0.5)
    weight = jax.random.uniform(k3, (1, D), minval=-bound, maxval=bound,
                                dtype=jnp.float32)
    bias = 0.1 * jax.random.normal(k4, (D,), dtype=jnp.float32)

    out = cross_interaction_layer(input_embeddings, hidden_states, weight, bias)
    out = jax.block_until_ready(out)

    ref = reference(input_embeddings, hidden_states, weight, bias)
    assert out.shape == (B, D)
    assert jnp.allclose(out, ref, atol=1e-5, rtol=1e-5)

    print("KERNEL_OK")
</pallas_src>

<mosaic_0001>
module attributes {stable_mosaic.version = 11 : i64} {
  func.func @_cross_interaction_kernel(%arg0: i32, %arg1: memref<152x96xf32, #tpu.memory_space<vmem>>, %arg2: memref<152x96xf32, #tpu.memory_space<vmem>>, %arg3: memref<1x96xf32, #tpu.memory_space<vmem>>, %arg4: memref<1x96xf32, #tpu.memory_space<vmem>>, %arg5: memref<152x96xf32, #tpu.memory_space<vmem>>) attributes {dimension_semantics = [#tpu.dimension_semantics<parallel>], iteration_bounds = array<i64: 2>, scalar_prefetch = 0 : i64, scratch_operands = 0 : i64, tpu.core_type = #tpu.core_type<tc>, window_params = [{transform_indices = @transform_0, window_bounds = array<i64: 152, 96>}, {transform_indices = @transform_1, window_bounds = array<i64: 152, 96>}, {pipeline_mode = #tpu.pipeline_mode<synchronous>, transform_indices = @transform_2, window_bounds = array<i64: 1, 96>}, {pipeline_mode = #tpu.pipeline_mode<synchronous>, transform_indices = @transform_3, window_bounds = array<i64: 1, 96>}, {transform_indices = @transform_4, window_bounds = array<i64: 152, 96>}]} {
    %c0 = arith.constant 0 : index
    %c0_0 = arith.constant 0 : index
    %0 = vector.load %arg2[%c0, %c0_0] : memref<152x96xf32, #tpu.memory_space<vmem>>, vector<152x96xf32>
    %c0_1 = arith.constant 0 : index
    %c0_2 = arith.constant 0 : index
    %1 = vector.load %arg3[%c0_1, %c0_2] : memref<1x96xf32, #tpu.memory_space<vmem>>, vector<1x96xf32>
    %2 = vector.broadcast %1 : vector<1x96xf32> to vector<152x96xf32>
    %3 = arith.mulf %0, %2 : vector<152x96xf32>
    %cst = arith.constant dense<0.000000e+00> : vector<152xf32>
    %4 = vector.multi_reduction <add>, %3, %cst [1] : vector<152x96xf32> to vector<152xf32>
    %5 = vector.shape_cast %4 : vector<152xf32> to vector<152x1xf32>
    %c0_3 = arith.constant 0 : index
    %c0_4 = arith.constant 0 : index
    %6 = vector.load %arg1[%c0_3, %c0_4] : memref<152x96xf32, #tpu.memory_space<vmem>>, vector<152x96xf32>
    %7 = vector.broadcast %5 : vector<152x1xf32> to vector<152x96xf32>
    %8 = arith.mulf %7, %6 : vector<152x96xf32>
    %c0_5 = arith.constant 0 : index
    %c0_6 = arith.constant 0 : index
    %9 = vector.load %arg4[%c0_5, %c0_6] : memref<1x96xf32, #tpu.memory_space<vmem>>, vector<1x96xf32>
    %10 = vector.broadcast %9 : vector<1x96xf32> to vector<152x96xf32>
    %11 = arith.addf %8, %10 : vector<152x96xf32>
    %c0_7 = arith.constant 0 : index
    %c0_8 = arith.constant 0 : index
    %12 = vector.load %arg5[%c0_7, %c0_8] : memref<152x96xf32, #tpu.memory_space<vmem>>, vector<152x96xf32>
    tpu.vector_store %arg5[%c0_7, %c0_8], %11 {strides = array<i32>} : memref<152x96xf32, #tpu.memory_space<vmem>>, vector<152x96xf32>,
    return
  }
  func.func @transform_0(%arg0: i32) -> (i32, i32) {
    %c0_i32 = arith.constant 0 : i32
    %c0_i32_0 = arith.constant 0 : i32
    return %arg0, %c0_i32 : i32, i32
  }
  func.func @transform_1(%arg0: i32) -> (i32, i32) {
    %c0_i32 = arith.constant 0 : i32
    %c0_i32_0 = arith.constant 0 : i32
    return %arg0, %c0_i32 : i32, i32
  }
  func.func @transform_2(%arg0: i32) -> (i32, i32) {
    %c0_i32 = arith.constant 0 : i32
    %c0_i32_0 = arith.constant 0 : i32
    %c0_i32_1 = arith.constant 0 : i32
    return %c0_i32, %c0_i32_0 : i32, i32
  }
  func.func @transform_3(%arg0: i32) -> (i32, i32) {
    %c0_i32 = arith.constant 0 : i32
    %c0_i32_0 = arith.constant 0 : i32
    %c0_i32_1 = arith.constant 0 : i32
    return %c0_i32, %c0_i32_0 : i32, i32
  }
  func.func @transform_4(%arg0: i32) -> (i32, i32) {
    %c0_i32 = arith.constant 0 : i32
    %c0_i32_0 = arith.constant 0 : i32
    return %arg0, %c0_i32 : i32, i32
  }
}

</mosaic_0001>

<bundles_post_ra>
// kernel: tpu_custom_call.1
= control target key start
LH: loop header
LB: loop body
LE: loop exit
PB: predicated region body
PF: predicated region fallthrough
CT: control target
= control target key end

     0   :  { %s530_s15 = smov 0   ;;  %s704_s0 = inlined_call_operand.vmem [shape: f32[300,96], index: 0, kind: input, shape index: {}]   ;;  %s705_s1 = inlined_call_operand.vmem [shape: f32[300,96], index: 1, kind: input, shape index: {}]   ;;  %s706_s2 = inlined_call_operand.vmem [shape: f32[1,96], index: 2, kind: input, shape index: {}]   ;;  %s707_s3 = inlined_call_operand.vmem [shape: f32[1,96], index: 3, kind: input, shape index: {}]   ;;  %s708_s4 = inlined_call_operand.vmem [shape: f32[300,96], index: 4, kind: output, shape index: {}]  }
   0x1 LB: > { %s477_s16 = sadd.s32 4294967295, %s503_s15   ;;  %p481_p0 = scmp.ge.s32.totalorder %s503_s15, 1  ;;  %s503_s15 = sphi %s530_s15, %s14_s15  }
   0x2   : > { %p174_p1 = scmp.lt.s32.totalorder %s503_s15, 3 }
   0x4   : > { %p175_p2 = pnand %p481_p0, %p174_p1 }
   0x5   : > { %s205_s17 = smul.u32 (!%p175_p2), 19, %s477_s16  ;;  %v543_v0 = vld [vmem:[%s706_s2] ss:$0 sm:$0xff] (!%p175_p2)  ;;  %vm268_vm0 = vcmask (!%p175_p2), 785408  }
   0x6   : > { %178 = sbr.rel (%p175_p2) target bundleno = 203 (0xcb), region = 36  ;;  %v619_v60 = vld [vmem:[%s707_s3] ss:$0 sm:$0xff] (!%p175_p2) }
   0x7   : > { %p206_p3 = scmp.lt.s32.totalorder (!%p175_p2), %s205_s17, 37 }
   0xd   : > { %s710_s17 = smov (!%p206_p3, %s205_s17), 37 }
   0xe   : > { %s538_s18 = sshll.u32 %s710_s17, 3 }
   0xf   : > { %s549_s23 = scalar_lea.vmem %s705_s1, %s538_s18  ;;  %s612_s26 = scalar_lea.vmem %s704_s0, %s538_s18 }
  0x10   : > { %v223_v1 = vld [vmem:[%s549_s23] sm:$0xff]  ;;  %v225_v2 = vld [vmem:[%s549_s23 + $0x10] sm:$0xff]  ;;  %v224_v3 = vld [vmem:[%s549_s23 + $0x8] sm:$0xff]  ;;  %s625_s5 = scalar_lea.vmem %s708_s4, %s538_s18 }
  0x11   : > { %v249_v4 = vmul.f32 %v543_v0, %v223_v1  ;;  %v251_v5 = vmul.f32 %v543_v0, %v225_v2  ;;  %v250_v6 = vmul.f32 %v543_v0, %v224_v3  ;;  %v226_v7 = vld [vmem:[%s549_s23 + $0x18] sm:$0xff]  ;;  %v227_v9 = vld [vmem:[%s549_s23 + $0x20] sm:$0xff]  ;;  %v228_v10 = vld [vmem:[%s549_s23 + $0x28] sm:$0xff] }
  0x12   : > { %v252_v8 = vmul.f32 %v543_v0, %v226_v7  ;;  %v253_v15 = vmul.f32 %v543_v0, %v227_v9  ;;  %v254_v16 = vmul.f32 %v543_v0, %v228_v10  ;;  %v229_v17 = vld [vmem:[%s549_s23 + $0x30] sm:$0xff]  ;;  %v230_v18 = vld [vmem:[%s549_s23 + $0x38] sm:$0xff]  ;;  %v231_v23 = vld [vmem:[%s549_s23 + $0x40] sm:$0xff] }
  0x13   : > { %v269_v11 = vsel %vm268_vm0, %v249_v4, 0.0  ;;  %v275_v12 = vsel %vm268_vm0, %v251_v5, 0.0  ;;  %v272_v13 = vsel %vm268_vm0, %v250_v6, 0.0  ;;  %v255_v21 = vmul.f32 %v543_v0, %v229_v17  ;;  %v232_v24 = vld [vmem:[%s549_s23 + $0x48] sm:$0xff]  ;;  %v233_v29 = vld [vmem:[%s549_s23 + $0x50] sm:$0xff]  ;;  %v234_v30 = vld [vmem:[%s549_s23 + $0x58] sm:$0xff] }
  0x14   : > { %270 = vadd.xlane.f32.xlu0 %v269_v11  ;;  %276 = vadd.xlane.f32.xlu1 %v275_v12  ;;  %v278_v14 = vsel %vm268_vm0, %v252_v8, 0.0  ;;  %v281_v19 = vsel %vm268_vm0, %v253_v15, 0.0  ;;  %v284_v20 = vsel %vm268_vm0, %v254_v16, 0.0  ;;  %v256_v22 = vmul.f32 %v543_v0, %v230_v18  ;;  %v235_v35 = vld [vmem:[%s549_s23 + $0x60] sm:$0xff]  ;;  %v236_v36 = vld [vmem:[%s549_s23 + $0x68] sm:$0xff]  ;;  %v237_v41 = vld [vmem:[%s549_s23 + $0x70] sm:$0xff] }
  0x15   : > { %v287_v25 = vsel %vm268_vm0, %v255_v21, 0.0  ;;  %v257_v27 = vmul.f32 %v543_v0, %v231_v23  ;;  %v258_v28 = vmul.f32 %v543_v0, %v232_v24  ;;  %v259_v33 = vmul.f32 %v543_v0, %v233_v29  ;;  %v238_v42 = vld [vmem:[%s549_s23 + $0x78] sm:$0xff]  ;;  %v239_v47 = vld [vmem:[%s549_s23 + $0x80] sm:$0xff]  ;;  %v240_v48 = vld [vmem:[%s549_s23 + $0x88] sm:$0xff] }
  0x16   : > { %v290_v26 = vsel %vm268_vm0, %v256_v22, 0.0  ;;  %v260_v34 = vmul.f32 %v543_v0, %v234_v30  ;;  %v261_v39 = vmul.f32 %v543_v0, %v235_v35  ;;  %v262_v40 = vmul.f32 %v543_v0, %v236_v36  ;;  %v241_v53 = vld [vmem:[%s549_s23 + $0x90] sm:$0xff]  ;;  %v326_v58 = vld [vmem:[%s612_s26] sm:$0xff]  ;;  %v327_v1 = vld [vmem:[%s612_s26 + $0x8] sm:$0xff] }
  0x17   : > { %v293_v31 = vsel %vm268_vm0, %v257_v27, 0.0  ;;  %v296_v32 = vsel %vm268_vm0, %v258_v28, 0.0  ;;  %v299_v37 = vsel %vm268_vm0, %v259_v33, 0.0  ;;  %v263_v45 = vmul.f32 %v543_v0, %v237_v41  ;;  %v328_v59 = vld [vmem:[%s612_s26 + $0x10] sm:$0xff]  ;;  %v329_v2 = vld [vmem:[%s612_s26 + $0x18] sm:$0xff]  ;;  %v330_v9 = vld [vmem:[%s612_s26 + $0x20] sm:$0xff] }
  0x18   : > { %273 = vadd.xlane.f32.xlu0 %v272_v13  ;;  %279 = vadd.xlane.f32.xlu1 %v278_v14  ;;  %v302_v38 = vsel %vm268_vm0, %v260_v34, 0.0  ;;  %v305_v43 = vsel %vm268_vm0, %v261_v39, 0.0  ;;  %v308_v44 = vsel %vm268_vm0, %v262_v40, 0.0  ;;  %v264_v46 = vmul.f32 %v543_v0, %v238_v42  ;;  %v331_v10 = vld [vmem:[%s612_s26 + $0x28] sm:$0xff]  ;;  %v332_v17 = vld [vmem:[%s612_s26 + $0x30] sm:$0xff]  ;;  %v333_v18 = vld [vmem:[%s612_s26 + $0x38] sm:$0xff] }
  0x19   : > { %v311_v49 = vsel %vm268_vm0, %v263_v45, 0.0  ;;  %v265_v51 = vmul.f32 %v543_v0, %v239_v47  ;;  %v266_v52 = vmul.f32 %v543_v0, %v240_v48  ;;  %v267_v56 = vmul.f32 %v543_v0, %v241_v53  ;;  %v336_v33 = vld [vmem:[%s612_s26 + $0x50] sm:$0xff]  ;;  %v337_v34 = vld [vmem:[%s612_s26 + $0x58] sm:$0xff]  ;;  %v338_v41 = vld [vmem:[%s612_s26 + $0x60] sm:$0xff] }
  0x1a   : > { %v314_v50 = vsel %vm268_vm0, %v264_v46, 0.0  ;;  %v339_v42 = vld [vmem:[%s612_s26 + $0x68] sm:$0xff] }
  0x1b   : > { %v317_v54 = vsel %vm268_vm0, %v265_v51, 0.0  ;;  %v320_v55 = vsel %vm268_vm0, %v266_v52, 0.0  ;;  %v323_v57 = vsel %vm268_vm0, %v267_v56, 0.0 }
  0x1c   : > { %282 = vadd.xlane.f32.xlu0 %v281_v19  ;;  %285 = vadd.xlane.f32.xlu1 %v284_v20 }
  0x20   : > { %288 = vadd.xlane.f32.xlu0 %v287_v25  ;;  %291 = vadd.xlane.f32.xlu1 %v290_v26  ;;  %v334_v25 = vld [vmem:[%s612_s26 + $0x40] sm:$0xff]  ;;  %v335_v26 = vld [vmem:[%s612_s26 + $0x48] sm:$0xff] }
  0x24   : > { %294 = vadd.xlane.f32.xlu0 %v293_v31  ;;  %297 = vadd.xlane.f32.xlu1 %v296_v32 }
  0x28   : > { %300 = vadd.xlane.f32.xlu0 %v299_v37  ;;  %303 = vadd.xlane.f32.xlu1 %v302_v38 }
  0x2c   : > { %306 = vadd.xlane.f32.xlu0 %v305_v43  ;;  %309 = vadd.xlane.f32.xlu1 %v308_v44 }
  0x30   : > { %312 = vadd.xlane.f32.xlu0 %v311_v49  ;;  %315 = vadd.xlane.f32.xlu1 %v314_v50  ;;  %v340_v49 = vld [vmem:[%s612_s26 + $0x70] sm:$0xff]  ;;  %v341_v50 = vld [vmem:[%s612_s26 + $0x78] sm:$0xff] }
  0x34   : > { %318 = vadd.xlane.f32.xlu0 %v317_v54  ;;  %321 = vadd.xlane.f32.xlu1 %v320_v55 }
  0x38   : > { %324 = vadd.xlane.f32.xlu0 %v323_v57  ;;  %v342_v57 = vld [vmem:[%s612_s26 + $0x80] sm:$0xff] }
  0xa1   : > { %v271_v61 = vpop.xlane.xlu0 %270  ;;  %v277_v62 = vpop.xlane.xlu1 %276 }
  0xa2   : > { %v345_v63 = vmul.f32 %v326_v58, %v271_v61  ;;  %v347_v0 = vmul.f32 %v328_v59, %v277_v62  ;;  %v343_v58 = vld [vmem:[%s612_s26 + $0x88] sm:$0xff] }
  0xa4   : > { %v371_v3 = vadd.f32 %v619_v60, %v345_v63  ;;  %v373_v4 = vadd.f32 %v619_v60, %v347_v0 }
  0xa5   : > { %v274_v5 = vpop.xlane.xlu0 %273  ;;  %v280_v6 = vpop.xlane.xlu1 %279 }
  0xa6   : > { %390 = vst.msk [vmem:[%s625_s5] sm:$0xff] %vm268_vm0, %v371_v3  ;;  %392 = vst.msk [vmem:[%s625_s5 + $0x10] sm:$0xff] %vm268_vm0, %v373_v4  ;;  %v346_v7 = vmul.f32 %v327_v1, %v274_v5  ;;  %v348_v8 = vmul.f32 %v329_v2, %v280_v6  ;;  %v344_v2 = vld [vmem:[%s612_s26 + $0x90] sm:$0xff] }
  0xa8   : > { %v372_v11 = vadd.f32 %v619_v60, %v346_v7  ;;  %v374_v12 = vadd.f32 %v619_v60, %v348_v8 }
  0xa9   : > { %v283_v13 = vpop.xlane.xlu0 %282  ;;  %v286_v14 = vpop.xlane.xlu1 %285 }
  0xaa   : > { %391 = vst.msk [vmem:[%s625_s5 + $0x8] sm:$0xff] %vm268_vm0, %v372_v11  ;;  %393 = vst.msk [vmem:[%s625_s5 + $0x18] sm:$0xff] %vm268_vm0, %v374_v12  ;;  %v349_v15 = vmul.f32 %v330_v9, %v283_v13  ;;  %v350_v16 = vmul.f32 %v331_v10, %v286_v14 }
  0xac   : > { %v375_v19 = vadd.f32 %v619_v60, %v349_v15  ;;  %v376_v20 = vadd.f32 %v619_v60, %v350_v16 }
  0xad   : > { %v289_v21 = vpop.xlane.xlu0 %288  ;;  %v292_v22 = vpop.xlane.xlu1 %291 }
  0xae   : > { %394 = vst.msk [vmem:[%s625_s5 + $0x20] sm:$0xff] %vm268_vm0, %v375_v19  ;;  %395 = vst.msk [vmem:[%s625_s5 + $0x28] sm:$0xff] %vm268_vm0, %v376_v20  ;;  %v351_v23 = vmul.f32 %v332_v17, %v289_v21  ;;  %v352_v24 = vmul.f32 %v333_v18, %v292_v22 }
  0xb0   : > { %v377_v27 = vadd.f32 %v619_v60, %v351_v23  ;;  %v378_v28 = vadd.f32 %v619_v60, %v352_v24 }
  0xb1   : > { %v295_v29 = vpop.xlane.xlu0 %294  ;;  %v298_v30 = vpop.xlane.xlu1 %297 }
  0xb2   : > { %396 = vst.msk [vmem:[%s625_s5 + $0x30] sm:$0xff] %vm268_vm0, %v377_v27  ;;  %397 = vst.msk [vmem:[%s625_s5 + $0x38] sm:$0xff] %vm268_vm0, %v378_v28  ;;  %v353_v31 = vmul.f32 %v334_v25, %v295_v29  ;;  %v354_v32 = vmul.f32 %v335_v26, %v298_v30 }
  0xb4   : > { %v379_v35 = vadd.f32 %v619_v60, %v353_v31  ;;  %v380_v36 = vadd.f32 %v619_v60, %v354_v32 }
  0xb5   : > { %v301_v37 = vpop.xlane.xlu0 %300  ;;  %v304_v38 = vpop.xlane.xlu1 %303 }
  0xb6   : > { %398 = vst.msk [vmem:[%s625_s5 + $0x40] sm:$0xff] %vm268_vm0, %v379_v35  ;;  %399 = vst.msk [vmem:[%s625_s5 + $0x48] sm:$0xff] %vm268_vm0, %v380_v36  ;;  %v355_v39 = vmul.f32 %v336_v33, %v301_v37  ;;  %v356_v40 = vmul.f32 %v337_v34, %v304_v38 }
  0xb8   : > { %v381_v43 = vadd.f32 %v619_v60, %v355_v39  ;;  %v382_v44 = vadd.f32 %v619_v60, %v356_v40 }
  0xb9   : > { %v307_v45 = vpop.xlane.xlu0 %306  ;;  %v310_v46 = vpop.xlane.xlu1 %309 }
  0xba   : > { %400 = vst.msk [vmem:[%s625_s5 + $0x50] sm:$0xff] %vm268_vm0, %v381_v43  ;;  %401 = vst.msk [vmem:[%s625_s5 + $0x58] sm:$0xff] %vm268_vm0, %v382_v44  ;;  %v357_v47 = vmul.f32 %v338_v41, %v307_v45  ;;  %v358_v48 = vmul.f32 %v339_v42, %v310_v46 }
  0xbc   : > { %v383_v51 = vadd.f32 %v619_v60, %v357_v47  ;;  %v384_v52 = vadd.f32 %v619_v60, %v358_v48 }
  0xbd   : > { %v313_v53 = vpop.xlane.xlu0 %312  ;;  %v316_v54 = vpop.xlane.xlu1 %315 }
  0xbe   : > { %402 = vst.msk [vmem:[%s625_s5 + $0x60] sm:$0xff] %vm268_vm0, %v383_v51  ;;  %403 = vst.msk [vmem:[%s625_s5 + $0x68] sm:$0xff] %vm268_vm0, %v384_v52  ;;  %v359_v55 = vmul.f32 %v340_v49, %v313_v53  ;;  %v360_v56 = vmul.f32 %v341_v50, %v316_v54 }
  0xc0   : > { %v385_v59 = vadd.f32 %v619_v60, %v359_v55  ;;  %v386_v61 = vadd.f32 %v619_v60, %v360_v56 }
  0xc1   : > { %v319_v62 = vpop.xlane.xlu0 %318  ;;  %v322_v63 = vpop.xlane.xlu1 %321 }
  0xc2   : > { %404 = vst.msk [vmem:[%s625_s5 + $0x70] sm:$0xff] %vm268_vm0, %v385_v59  ;;  %405 = vst.msk [vmem:[%s625_s5 + $0x78] sm:$0xff] %vm268_vm0, %v386_v61  ;;  %v361_v0 = vmul.f32 %v342_v57, %v319_v62  ;;  %v362_v1 = vmul.f32 %v343_v58, %v322_v63 }
  0xc4   : > { %v387_v3 = vadd.f32 %v619_v60, %v361_v0  ;;  %v388_v4 = vadd.f32 %v619_v60, %v362_v1 }
  0xc5   : > { %v325_v5 = vpop.xlane.xlu0 %324 }
  0xc6   : > { %406 = vst.msk [vmem:[%s625_s5 + $0x80] sm:$0xff] %vm268_vm0, %v387_v3  ;;  %407 = vst.msk [vmem:[%s625_s5 + $0x88] sm:$0xff] %vm268_vm0, %v388_v4  ;;  %v363_v6 = vmul.f32 %v344_v2, %v325_v5 }
  0xc8   : > { %v389_v7 = vadd.f32 %v619_v60, %v363_v6 }
  0xca   : > { %408 = vst.msk [vmem:[%s625_s5 + $0x90] sm:$0xff] %vm268_vm0, %v389_v7 }
  0xcb PF: > { %s14_s15 = sadd.s32 1, %s503_s15  }
  0xcc   : > { %p11_p4 = scmp.ge.s32.totalorder %s14_s15, 4  }
  0xce   :  { %13 = sbr.rel (!%p11_p4) target bundleno = 1 (0x1), region = 69 }

</bundles_post_ra>
